<compile_context>
chip_gen: v6e
topology: v6e:2x2x1
jax: 0.10.0
libtpu: 0.0.40
codegen_flags: <defaults>
</compile_context>

<pallas_src>
import math
import jax
import jax.numpy as jnp
from jax import lax
from jax.experimental import pallas as pl
from jax.experimental.pallas import tpu as pltpu

TWO_PI = 2.0 * math.pi
ARCSEC_TO_RAD = math.pi / (180.0 * 3600.0)
KLAMBDA_TO_LAMBDA = 1.0e3


def _round_up(x, m):
    return ((x + m - 1) // m) * m


def _physical_vmem_bytes():
    try:
        return int(pltpu.get_tpu_info().vmem_capacity_bytes)
    except Exception:
        return 64 << 20  # conservative fallback (v7x per-TC VMEM)


# ----------------------------------------------------------------------------------
# Kernel 1: softplus (BaseCube) + 3x3 Hann depthwise conv (HannConvCube), fused with
# the ImageCube passthrough and the NuFFT pre-scale:
#     out = hann2d(softplus(base)) * pixel_area, cast to bf16 (MXU operand for NUDFT).
# ----------------------------------------------------------------------------------
def _hann_1d(y, axis):
    """Zero-padded [0.25, 0.5, 0.25] filter along `axis`, roll-based (shape preserving)."""
    n = y.shape[axis]
    idx = lax.broadcasted_iota(jnp.int32, y.shape, axis)
    # circular neighbor sum; using +1 and n-1 rolls makes this direction-agnostic
    neigh = pltpu.roll(y, 1, axis) + pltpu.roll(y, n - 1, axis)
    # subtract the two circular-wrap contributions so edges see zero padding
    first = lax.slice_in_dim(y, 0, 1, axis=axis)
    last = lax.slice_in_dim(y, n - 1, n, axis=axis)
    wrap = jnp.where(idx == 0, last, 0.0) + jnp.where(idx == n - 1, first, 0.0)
    return 0.5 * y + 0.25 * (neigh - wrap)


def softplus_hann_sky(base_cube, pixel_area):
    """BaseCube -> HannConvCube -> (pixel_area scale, bf16). Returns (C,N,N) bf16."""
    C, N, _ = base_cube.shape
    pixel_area = float(pixel_area)

    def kernel(base_ref, out_ref):
        x = base_ref[0]                                           # (N, N) f32
        # numerically stable softplus: max(x,0) + log(1 + exp(-|x|))
        # TODO(synk): log1p would be marginally more accurate near 0.
        y = jnp.maximum(x, 0.0) + jnp.log(1.0 + jnp.exp(-jnp.abs(x)))
        t = _hann_1d(y, axis=1)                                   # column (l / RA) pass
        z = _hann_1d(t, axis=0)                                   # row (m / Dec) pass
        out_ref[0] = (z * pixel_area).astype(out_ref.dtype)

    # TODO(synk): for very large npix on v7x, also tile over row blocks (1-row halo).
    return pl.pallas_call(
        kernel,
        out_shape=jax.ShapeDtypeStruct((C, N, N), jnp.bfloat16),
        grid=(C,),
        in_specs=[pl.BlockSpec((1, N, N), lambda c: (c, 0, 0))],
        out_specs=pl.BlockSpec((1, N, N), lambda c: (c, 0, 0)),
        compiler_params=pltpu.CompilerParams(dimension_semantics=("parallel",)),
    )(base_cube)


# ----------------------------------------------------------------------------------
# Kernel 2: separable direct NUDFT (NuFFT replacement), tiled over visibilities.
#
#   V[c, k] = sum_{m,l} I[c, m, l] * exp(-2*pi*i*(u_k*l + v_k*m))       (I pre-scaled)
#   A[m,k] = sum_l I cos(2*pi*u_k*l),  B[m,k] = sum_l I sin(2*pi*u_k*l)
#   re = sum_m (A cos_m - B sin_m),   im = -sum_m (A sin_m + B cos_m)
# ----------------------------------------------------------------------------------
def _pick_tv(C, N, nvis, vmem_limit_bytes):
    """Pick the visibility tile width from the VMEM budget (multiple of 256, <=2048)."""
    per_col = (10 + 2 * C) * N * 4            # rough live (N, tv) f32 intermediates per column
    resident = C * N * N * 2 + (4 << 20)      # single-buffered bf16 image + headroom
    avail = max(vmem_limit_bytes - resident, 1 << 20)
    tv = int(avail // per_col)
    tv = max(256, min(2048, (tv // 256) * 256))
    tv = min(tv, _round_up(nvis, 256))
    return tv


def nudft(img_bf16, uu, vv, dl_rad, dm_rad, *, tv=None, vmem_limit_bytes=None):
    """Separable direct type-2 NUDFT of a bf16 image cube (already scaled by pixel area).

    Returns (re, im), each (C, nvis) float32.
    """
    C, N, _ = img_bf16.shape
    nvis = uu.shape[1]

    if vmem_limit_bytes is None:
        # ~3/4 of physical VMEM: 96 MiB on 128-MiB v5e/v6e, 48 MiB on 64-MiB v7x.
        vmem_limit_bytes = min(int(_physical_vmem_bytes() * 3 // 4), 96 << 20)
    if tv is None:
        tv = _pick_tv(C, N, nvis, vmem_limit_bytes)

    nvis_pad = _round_up(nvis, tv)
    pad = nvis_pad - nvis
    uu_p = jnp.pad(uu, ((0, 0), (0, pad)))
    vv_p = jnp.pad(vv, ((0, 0), (0, pad)))
    img2d = img_bf16.reshape(C * N, N)        # free row-major merge; avoids in-kernel reshape

    half = float(N // 2)
    dl_rad = float(dl_rad)
    dm_rad = float(dm_rad)

    def kernel(uu_ref, vv_ref, img_ref, re_ref, im_ref):
        # centered pixel index along sublanes: l_n = (n - N/2) * dl (and m likewise)
        idx = lax.broadcasted_iota(jnp.int32, (N, 1), 0).astype(jnp.float32) - half
        # fractional phase step per pixel (cycles); the integer part of u*dl drops out
        # exactly because the pixel index is an integer -> accurate f32 range reduction.
        su = uu_ref[...] * dl_rad
        sv = vv_ref[...] * dm_rad
        su = su - jnp.floor(su)
        sv = sv - jnp.floor(sv)
        tl = idx * su                                             # (N, TV) cycles
        tm = idx * sv
        ph_l = TWO_PI * (tl - jnp.floor(tl))
        ph_m = TWO_PI * (tm - jnp.floor(tm))
        cos_l = jnp.cos(ph_l)
        sin_l = jnp.sin(ph_l)
        cos_m = jnp.cos(ph_m)
        sin_m = jnp.sin(ph_m)
        # TODO(synk): on v5e (EUP-bound when C*N is small) cut cos/sin count ~8x via
        # angle addition from per-sublane base angles.

        # One batched MXU matmul over l for all channels and both bases:
        #   (C*N, N) bf16 @ (N, 2*TV) bf16 -> f32 accumulate.
        basis = jnp.concatenate([cos_l, sin_l], axis=1).astype(jnp.bfloat16)
        ab = jnp.dot(img_ref[...], basis, preferred_element_type=jnp.float32)

        TV = uu_ref.shape[1]
        re_rows, im_rows = [], []
        for c in range(C):                                        # nchan is small & static
            al = ab[c * N:(c + 1) * N, :TV]                       # sum_l I cos(2 pi u l)
            bl = ab[c * N:(c + 1) * N, TV:]                       # sum_l I sin(2 pi u l)
            re_rows.append(jnp.sum(al * cos_m - bl * sin_m, axis=0, keepdims=True))
            im_rows.append(-jnp.sum(al * sin_m + bl * cos_m, axis=0, keepdims=True))
        re_ref[...] = jnp.concatenate(re_rows, axis=0)            # single dense (C, TV) store
        im_ref[...] = jnp.concatenate(im_rows, axis=0)

    # grid-invariant image block: single-buffered, stays resident in VMEM
    try:
        img_spec = pl.BlockSpec((C * N, N), lambda k: (0, 0),
                                pipeline_mode=pl.Buffered(1))
    except (TypeError, AttributeError):
        img_spec = pl.BlockSpec((C * N, N), lambda k: (0, 0))

    grid = (nvis_pad // tv,)
    cost = pl.CostEstimate(
        flops=int(4 * C * N * N * nvis_pad + 10 * C * N * nvis_pad + 12 * N * nvis_pad),
        transcendentals=int(4 * N * nvis_pad),
        # image fetched once (grid-invariant), uu/vv and outputs once per element
        bytes_accessed=int(2 * C * N * N + 4 * (2 * nvis_pad + 2 * C * nvis_pad)),
    )

    re, im = pl.pallas_call(
        kernel,
        out_shape=(
            jax.ShapeDtypeStruct((C, nvis_pad), jnp.float32),
            jax.ShapeDtypeStruct((C, nvis_pad), jnp.float32),
        ),
        grid=grid,
        in_specs=[
            pl.BlockSpec((1, tv), lambda k: (0, k)),
            pl.BlockSpec((1, tv), lambda k: (0, k)),
            img_spec,
        ],
        out_specs=(
            pl.BlockSpec((C, tv), lambda k: (0, k)),
            pl.BlockSpec((C, tv), lambda k: (0, k)),
        ),
        compiler_params=pltpu.CompilerParams(
            dimension_semantics=("parallel",),            # shards vis tiles across v7x's 2 TCs
            vmem_limit_bytes=int(vmem_limit_bytes),
        ),
        cost_estimate=cost,
    )(uu_p, vv_p, img2d)
    return re[:, :nvis], im[:, :nvis]


# ----------------------------------------------------------------------------------
# Net.forward glue
# ----------------------------------------------------------------------------------
def net_forward(base_cube, uu_klambda, vv_klambda, cell_size, *, tv=None):
    """Predict model visibilities at (uu, vv) [klambda]. Returns (nchan, nvis) complex64."""
    C, N, _ = base_cube.shape

    pixel_area = float(cell_size) * float(cell_size)              # arcsec^2
    # BaseCube -> HannConvCube -> ImageCube passthrough, pre-scaled + bf16 for the NUDFT
    sky = softplus_hann_sky(base_cube, pixel_area)                # (C, N, N) bf16, Jy/pixel
    # TODO(synk): bf16 image / cos-sin basis (~0.4% per-term) should be validated against
    #             an f32-MXU reference for high-dynamic-range RML fits.

    dpix_rad = float(cell_size) * ARCSEC_TO_RAD                   # pixel spacing [rad]
    uu = (uu_klambda.astype(jnp.float32) * KLAMBDA_TO_LAMBDA).reshape(1, -1)   # [lambda]
    vv = (vv_klambda.astype(jnp.float32) * KLAMBDA_TO_LAMBDA).reshape(1, -1)

    re, im = nudft(sky, uu, vv, dpix_rad, dpix_rad, tv=tv)
    return (re + 1j * im).astype(jnp.complex64)


if __name__ == "__main__":
    key = jax.random.PRNGKey(0)
    k_base, k_uu, k_vv = jax.random.split(key, 3)

    # small shapes consistent with the module
    nchan = 2          # nchan
    npix = 16          # coords.npix
    cell_size = 0.05   # arcsec
    nvis = 200         # deliberately NOT tile-aligned (exercises the padding path)

    # ---- parameters / buffers from __init__ (deterministic, synthetic) ----
    # MPoL BaseCube default init is a constant 0.05 cube; add a small deterministic jitter.
    base_cube = (0.05 + 0.01 * jax.random.normal(k_base, (nchan, npix, npix))).astype(jnp.float32)

    # obsid bookkeeping buffers/params (used only by adjust_weights/adjust_amplitudes,
    # NOT by forward(); initialized here for completeness, shapes per __init__).
    obsid_dict = {0: [0, 1], 1: [2]}
    ddid2obsid = jnp.array([o for o, dd in obsid_dict.items() for _ in dd], jnp.int32)
    log10_amp_factors = jnp.zeros((len(obsid_dict) - 1,), jnp.float32)
    log10_sigma_factors = jnp.zeros((ddid2obsid.shape[0],), jnp.float32)
    zero_val = jnp.zeros((1,), jnp.float32)
    del ddid2obsid, log10_amp_factors, log10_sigma_factors, zero_val  # unused in forward

    # ---- forward inputs ----
    uu = jax.random.uniform(k_uu, (nvis,), jnp.float32, -500.0, 500.0)  # klambda
    vv = jax.random.uniform(k_vv, (nvis,), jnp.float32, -500.0, 500.0)  # klambda

    vis = net_forward(base_cube, uu, vv, cell_size)
    vis = jax.block_until_ready(vis)

    assert vis.shape == (nchan, nvis) and vis.dtype == jnp.complex64
    assert bool(jnp.all(jnp.isfinite(vis.real)) & jnp.all(jnp.isfinite(vis.imag)))
    print("KERNEL_OK")
</pallas_src>

<mosaic_0001>
module attributes {stable_mosaic.version = 11 : i64} {
  func.func @kernel(%arg0: i32, %arg1: memref<1x16x16xf32, #tpu.memory_space<vmem>>, %arg2: memref<1x16x16xbf16, #tpu.memory_space<vmem>>) attributes {dimension_semantics = [#tpu.dimension_semantics<parallel>], iteration_bounds = array<i64: 2>, scalar_prefetch = 0 : i64, scratch_operands = 0 : i64, tpu.core_type = #tpu.core_type<tc>, window_params = [{transform_indices = @transform_0, window_bounds = array<i64: 1, 16, 16>}, {transform_indices = @transform_1, window_bounds = array<i64: 1, 16, 16>}]} {
    %c0 = arith.constant 0 : index
    %c0_0 = arith.constant 0 : index
    %c0_1 = arith.constant 0 : index
    %0 = vector.load %arg1[%c0, %c0_0, %c0_1] : memref<1x16x16xf32, #tpu.memory_space<vmem>>, vector<1x16x16xf32>
    %1 = vector.shape_cast %0 : vector<1x16x16xf32> to vector<16x16xf32>
    %cst = arith.constant 0.000000e+00 : f32
    %2 = vector.broadcast %cst : f32 to vector<16x16xf32>
    %3 = arith.maximumf %1, %2 : vector<16x16xf32>
    %4 = math.absf %1 : vector<16x16xf32>
    %cst_2 = arith.constant 0.000000e+00 : f32
    %5 = vector.broadcast %cst_2 : f32 to vector<16x16xf32>
    %6 = arith.subf %5, %4 : vector<16x16xf32>
    %7 = math.exp %6 : vector<16x16xf32>
    %cst_3 = arith.constant 1.000000e+00 : f32
    %8 = vector.broadcast %cst_3 : f32 to vector<16x16xf32>
    %9 = arith.addf %8, %7 : vector<16x16xf32>
    %10 = math.log %9 : vector<16x16xf32>
    %11 = arith.addf %3, %10 : vector<16x16xf32>
    %12 = tpu.iota {dimensions = array<i32: 1>} : vector<16x16xi32>
    %c1_i32 = arith.constant 1 : i32
    %13 = tpu.dynamic_rotate %11 by %c1_i32 dim 1 : vector<16x16xf32>, i32 -> vector<16x16xf32>
    %c15_i32 = arith.constant 15 : i32
    %14 = tpu.dynamic_rotate %11 by %c15_i32 dim 1 : vector<16x16xf32>, i32 -> vector<16x16xf32>
    %15 = arith.addf %13, %14 : vector<16x16xf32>
    %16 = vector.extract_strided_slice %11 {offsets = [0, 0], sizes = [16, 1], strides = [1, 1]} : vector<16x16xf32> to vector<16x1xf32>
    %17 = vector.extract_strided_slice %11 {offsets = [0, 15], sizes = [16, 1], strides = [1, 1]} : vector<16x16xf32> to vector<16x1xf32>
    %c0_i32 = arith.constant 0 : i32
    %18 = vector.broadcast %c0_i32 : i32 to vector<16x16xi32>
    %19 = arith.cmpi eq, %12, %18 : vector<16x16xi32>
    %cst_4 = arith.constant 0.000000e+00 : f32
    %20 = vector.shape_cast %17 : vector<16x1xf32> to vector<16x1xf32>
    %21 = vector.broadcast %20 : vector<16x1xf32> to vector<16x16xf32>
    %22 = vector.broadcast %cst_4 : f32 to vector<16x16xf32>
    %23 = arith.select %19, %21, %22 : vector<16x16xi1>, vector<16x16xf32>
    %c15_i32_5 = arith.constant 15 : i32
    %24 = vector.broadcast %c15_i32_5 : i32 to vector<16x16xi32>
    %25 = arith.cmpi eq, %12, %24 : vector<16x16xi32>
    %cst_6 = arith.constant 0.000000e+00 : f32
    %26 = vector.shape_cast %16 : vector<16x1xf32> to vector<16x1xf32>
    %27 = vector.broadcast %26 : vector<16x1xf32> to vector<16x16xf32>
    %28 = vector.broadcast %cst_6 : f32 to vector<16x16xf32>
    %29 = arith.select %25, %27, %28 : vector<16x16xi1>, vector<16x16xf32>
    %30 = arith.addf %23, %29 : vector<16x16xf32>
    %cst_7 = arith.constant 5.000000e-01 : f32
    %31 = vector.broadcast %cst_7 : f32 to vector<16x16xf32>
    %32 = arith.mulf %31, %11 : vector<16x16xf32>
    %33 = arith.subf %15, %30 : vector<16x16xf32>
    %cst_8 = arith.constant 2.500000e-01 : f32
    %34 = vector.broadcast %cst_8 : f32 to vector<16x16xf32>
    %35 = arith.mulf %34, %33 : vector<16x16xf32>
    %36 = arith.addf %32, %35 : vector<16x16xf32>
    %37 = tpu.iota {dimensions = array<i32: 0>} : vector<16x16xi32>
    %c1_i32_9 = arith.constant 1 : i32
    %38 = tpu.dynamic_rotate %36 by %c1_i32_9 dim 0 : vector<16x16xf32>, i32 -> vector<16x16xf32>
    %c15_i32_10 = arith.constant 15 : i32
    %39 = tpu.dynamic_rotate %36 by %c15_i32_10 dim 0 : vector<16x16xf32>, i32 -> vector<16x16xf32>
    %40 = arith.addf %38, %39 : vector<16x16xf32>
    %41 = vector.extract_strided_slice %36 {offsets = [0, 0], sizes = [1, 16], strides = [1, 1]} : vector<16x16xf32> to vector<1x16xf32>
    %42 = vector.extract_strided_slice %36 {offsets = [15, 0], sizes = [1, 16], strides = [1, 1]} : vector<16x16xf32> to vector<1x16xf32>
    %c0_i32_11 = arith.constant 0 : i32
    %43 = vector.broadcast %c0_i32_11 : i32 to vector<16x16xi32>
    %44 = arith.cmpi eq, %37, %43 : vector<16x16xi32>
    %cst_12 = arith.constant 0.000000e+00 : f32
    %45 = vector.shape_cast %42 : vector<1x16xf32> to vector<1x16xf32>
    %46 = vector.broadcast %45 : vector<1x16xf32> to vector<16x16xf32>
    %47 = vector.broadcast %cst_12 : f32 to vector<16x16xf32>
    %48 = arith.select %44, %46, %47 : vector<16x16xi1>, vector<16x16xf32>
    %c15_i32_13 = arith.constant 15 : i32
    %49 = vector.broadcast %c15_i32_13 : i32 to vector<16x16xi32>
    %50 = arith.cmpi eq, %37, %49 : vector<16x16xi32>
    %cst_14 = arith.constant 0.000000e+00 : f32
    %51 = vector.shape_cast %41 : vector<1x16xf32> to vector<1x16xf32>
    %52 = vector.broadcast %51 : vector<1x16xf32> to vector<16x16xf32>
    %53 = vector.broadcast %cst_14 : f32 to vector<16x16xf32>
    %54 = arith.select %50, %52, %53 : vector<16x16xi1>, vector<16x16xf32>
    %55 = arith.addf %48, %54 : vector<16x16xf32>
    %cst_15 = arith.constant 5.000000e-01 : f32
    %56 = vector.broadcast %cst_15 : f32 to vector<16x16xf32>
    %57 = arith.mulf %56, %36 : vector<16x16xf32>
    %58 = arith.subf %40, %55 : vector<16x16xf32>
    %cst_16 = arith.constant 2.500000e-01 : f32
    %59 = vector.broadcast %cst_16 : f32 to vector<16x16xf32>
    %60 = arith.mulf %59, %58 : vector<16x16xf32>
    %61 = arith.addf %57, %60 : vector<16x16xf32>
    %cst_17 = arith.constant 2.500000e-03 : f32
    %62 = vector.broadcast %cst_17 : f32 to vector<16x16xf32>
    %63 = arith.mulf %61, %62 : vector<16x16xf32>
    %64 = arith.truncf %63 : vector<16x16xf32> to vector<16x16xbf16>
    %c0_18 = arith.constant 0 : index
    %c0_19 = arith.constant 0 : index
    %c0_20 = arith.constant 0 : index
    %65 = vector.load %arg2[%c0_18, %c0_19, %c0_20] : memref<1x16x16xbf16, #tpu.memory_space<vmem>>, vector<1x16x16xbf16>
    %66 = vector.shape_cast %65 : vector<1x16x16xbf16> to vector<16x16xbf16>
    %67 = vector.shape_cast %64 : vector<16x16xbf16> to vector<1x16x16xbf16>
    tpu.vector_store %arg2[%c0_18, %c0_19, %c0_20], %67 {strides = array<i32>} : memref<1x16x16xbf16, #tpu.memory_space<vmem>>, vector<1x16x16xbf16>,
    return
  }
  func.func @transform_0(%arg0: i32) -> (i32, i32, i32) {
    %c0_i32 = arith.constant 0 : i32
    %c0_i32_0 = arith.constant 0 : i32
    %c0_i32_1 = arith.constant 0 : i32
    return %arg0, %c0_i32, %c0_i32_0 : i32, i32, i32
  }
  func.func @transform_1(%arg0: i32) -> (i32, i32, i32) {
    %c0_i32 = arith.constant 0 : i32
    %c0_i32_0 = arith.constant 0 : i32
    %c0_i32_1 = arith.constant 0 : i32
    return %arg0, %c0_i32, %c0_i32_0 : i32, i32, i32
  }
}

</mosaic_0001>

<bundles_post_ra>
// kernel: tpu_custom_call.1
= control target key start
LH: loop header
LB: loop body
LE: loop exit
PB: predicated region body
PF: predicated region fallthrough
CT: control target
= control target key end

     0   :  { %6 = vsyncpa [#allocation3], 0  ;;  %s733_s0 = inlined_call_operand.hbm [shape: f32[2,16,16], index: 0, kind: input, shape index: {}]   ;;  %s734_s1 = inlined_call_operand.hbm [shape: bf16[2,16,16], index: 1, kind: output, shape index: {}]  }
   0x1   :  { %8 = vsyncpa [#allocation3 + $0x1], 0 }
   0x2   :  { %9 = vsyncpa [#allocation4], 0 }
   0x3   :  { %11 = vsyncpa [#allocation4 + $0x1], 0  ;;  %s574_s6 = smov 0   ;;  %s576_s7 = smov 0  }
   0x4   :  { %s578_s8 = smov 0   ;;  %s580_s9 = smov 0  }
   0x5 LB: > { %s595_s10 = sadd.s32 4294967295, %s550_s9   ;;  %s371_s11 = sadd.s32 4294967294, %s550_s9   ;;  %s550_s9 = sphi %s580_s9, %s749_s9   ;;  %s546_s8 = sphi %s578_s8, %s748_s8   ;;  %s542_s7 = sphi %s576_s7, %s747_s7   ;;  %s538_s6 = sphi %s574_s6, %s746_s6  }
   0x6   : > { %s599_s12 = sadd.s32 1, %s550_s9   ;;  %s24_s13 = sadd.s32 1, %s546_s8 }
   0x7   : > { %s21_s14 = ssub.s32 %s550_s9, %s599_s12  ;;  %p31_p0 = scmp.ne.s32.totalorder %s546_s8, %s542_s7 }
   0x8   : > { %p22_p1 = scmp.eq.s32.totalorder %s21_s14, 0  ;;  %p32_p2 = scmp.eq.s32.totalorder %s550_s9, 0 }
   0x9   : > { %p37_p3 = scmp.ne.s32.totalorder %s542_s7, %s538_s6  ;;  %p38_p4 = scmp.eq.s32.totalorder %s595_s10, 0 }
   0xa   : > { %s611_s15 = scalar_select %p22_p1, %s546_s8, %s24_s13  }
   0xb   : > { %p613_p5 = por %p32_p2, %p31_p0  ;;  %p617_p6 = por %p38_p4, %p37_p3 }
   0xc   : > { %p61_p7 = scmp.eq.s32.totalorder %s595_s10, 1  ;;  %p67_p8 = scmp.eq.s32.totalorder %s371_s11, 1 }
   0xd   : > { %s738_s17 = scalar_select %p617_p6, 1, 0 }
   0xe   : > { %p403_p10 = scmp.lt.s32.totalorder %s550_s9, 2  ;;  %p624_p11 = por %p61_p7, %p31_p0 }
   0xf   : > { %p628_p12 = por %p67_p8, %p37_p3  ;;  %s87_s20 = sand.u32 1, %s546_s8  }
  0x10   : > { %s739_s18 = scalar_select %p624_p11, 1, 0 }
  0x11   : > { %s740_s19 = scalar_select %p628_p12, 1, 0 }
  0x12   : > { %s387_s21 = sshll.u32 %s550_s9, 8  ;;  %s374_s22 = sshll.u32 %s87_s20, 4 }
  0x13   : > { %s637_s25 = scalar_lea.hbm %s733_s0, %s387_s21  ;;  %s91_s26 = scalar_lea.vmem [#allocation2], %s374_s22 }
  0x14   : > { %s98_s27 = sshll.u32 %s91_s26, 4  ;;  %p641_p13 = pnand %p403_p10, %p613_p5  ;;  %s645_s27 = int_to_ptr.vmem [resolvable:$true] %s98_s27 }
  0x15   : > { %s647_s29 = scalar_lea.sflag [#allocation3], %s87_s20  ;;  %s458_s30 = scalar_lea.hbm %s637_s25, 256 }
  0x16   : > { %p459_p0 = scmp.ne.s32.totalorder %s637_s25, %s458_s30  ;;  %p460_p1 = pneg %p641_p13 }
  0x17   : > { %s463_s4 = scalar_lea.hbm %s733_s0, 512  ;;  %p464_p4 = scmp.lt.s32.totalorder %s637_s25, %s733_s0 }
  0x18   : > { %p461_p2 = pnand %p460_p1, %p459_p0  ;;  %p465_p5 = scmp.lt.s32.totalorder %s463_s4, %s458_s30 }
  0x1a   : > { %p462_p3 = pneg %p461_p2  ;;  %p466_p7 = por %p465_p5, %p464_p4 }
  0x1c   : > { %p467_p8 = pnand %p466_p7, %p462_p3 }
  0x1e   : > { %470 = shalt.err (!%p467_p8)
}
  0x1f   : > { %s471_s13 = scalar_lea.vmem %s645_s27, 256  ;;  %s552_s14 = smov [#allocation2]  }
  0x20   : > { %p472_p10 = scmp.ne.s32.totalorder %s645_s27, %s471_s13  ;;  %s476_s16 = sshll.u32 %s552_s14, 4  ;;  %s477_s16 = int_to_ptr.vmem [resolvable:$false] %s476_s16 }
  0x21   : > { %s478_s20 = scalar_lea.vmem %s477_s16, 512  ;;  %p479_p2 = scmp.lt.s32.totalorder %s645_s27, %s477_s16 }
  0x22   : > { %p474_p9 = pnand %p472_p10, %p460_p1  ;;  %p480_p12 = scmp.lt.s32.totalorder %s478_s20, %s471_s13 }
  0x24   : > { %p475_p0 = pneg %p474_p9  ;;  %p481_p11 = por %p480_p12, %p479_p2 }
  0x26   : > { %p482_p6 = pnand %p481_p11, %p475_p0 }
  0x28   : > { %485 = shalt.err (!%p482_p6)
}
  0x29   : > { %s553_s21 = smov 128   ;;  %s554_s22 = smov 8  }
  0x2a   : > { %398 = dma.hbm_to_vmem [thread:$0]  (!%p641_p13), %s637_s25, 256, %s645_s27, %s647_s29, %s553_s21, %s553_s21, %s554_s22  }
  0x2b   : > { %p377_p9 = scmp.ge.s32.totalorder %s550_s9, 1  ;;  %p106_p1 = scmp.lt.s32.totalorder %s550_s9, 3 }
  0x2d   : > { %p107_p3 = pnand %p377_p9, %p106_p1 }
  0x2e   : > { %s671_s23 = sand.u32 (!%p107_p3), 1, %s542_s7   ;;  %p742_p6 = scmp.ne.s32.totalorder (!%p107_p3), %s738_s17, 0 }
  0x2f   : > { %110 = sbr.rel (%p107_p3) target bundleno = 599 (0x257), region = 24  ;;  %s378_s24 = sshll.u32 (!%p107_p3), %s671_s23, 4 }
  0x30   : > { %s113_s26 = scalar_lea.sflag (!%p107_p3), [#allocation3], %s671_s23  ;;  %s116_s30 = scalar_lea.vmem (!%p107_p3), [#allocation2], %s378_s24 }
  0x34   : > { %529 = dma.done.wait (%p742_p6), %s113_s26, 256  }
  0x35   : > { %531 = vsyncadd (%p742_p6), %s113_s26, 4294967040  ;;  %v555_v0 = vmov 15   ;;  %v556_v1 = vmov 0   ;;  %v135_v2 = vld [vmem:[%s116_s30] sm:$0xff]  ;;  %v136_v3 = vld [vmem:[%s116_s30 + $0x8] sm:$0xff]  ;;  %s557_s17 = smov 16   ;;  %v155_v27 = vlaneseq }
  0x36   : > { %447 = vset.pattern.permute.xlu1 %v555_v0  ;;  %448 = vset.pattern.permute.xlu0 %v556_v1  ;;  %v139_v4 = vand.u32 2147483647, %v135_v2  ;;  %v140_v5 = vand.u32 2147483647, %v136_v3  ;;  %v137_v14 = vmax.f32 %v135_v2, 0.0  ;;  %v138_v18 = vmax.f32 %v136_v3, 0.0 }
  0x37   : > { %vm157_vm0 = vcmask 1047680   ;;  %v156_v29 = vand.u32 127, %v155_v27  ;;  %s558_s25 = smov 14   ;;  %s559_s27 = smov 15   ;;  %v231_v53 = vshrl.u32 %v155_v27, 7  ;;  %vm281_vm7 = vcmask 125952  }
  0x38   : > { %v141_v6 = vsub.f32 0.0, %v139_v4  ;;  %v142_v7 = vsub.f32 0.0, %v140_v5  ;;  %s560_s28 = smov 113   ;;  %s379_s29 = sshll.u32 %s671_s23, 3 }
  0x39   : > { %vm180_vm1 = vcmp.eq.s32.totalorder %v156_v29, 0  ;;  %vm193_vm2 = vcmp.eq.s32.totalorder %v156_v29, 15  ;;  %v257_v57 = vsub.s32 0, %v231_v53  ;;  %v249_v58 = vsub.s32 7, %v231_v53  ;;  %s390_s2 = sshll.u32 %s595_s10, 7  ;;  %s134_s3 = scalar_lea.vmem [#allocation5], %s379_s29 }
  0x3a   : > { %v143_v8 = vmul.f32 1.442695, %v141_v6  ;;  %v145_v9 = vmul.f32 1.442695, %v142_v7  ;;  %v232_v59 = vadd.s32 8, %v231_v53  ;;  %vm235_vm3 = vcmp.lt.s32.totalorder %v231_v53, 1  ;;  %s688_s13 = scalar_lea.hbm %s734_s1, %s390_s2 }
  0x3b   : > { %vm240_vm4 = vcmp.lt.s32.totalorder %v231_v53, 7  ;;  %vm245_vm6 = vcmp.eq.s32.totalorder %v231_v53, 0  ;;  %s298_s4 = sshll.u32 %s134_s3, 4  ;;  %s285_s10 = scalar_lea.sflag [#allocation4], %s671_s23  ;;  %s690_s4 = int_to_ptr.vmem [resolvable:$true] %s298_s4 }
  0x3c   : > { %450 = vpow2.f32 %v143_v8  ;;  %vm254_vm5 = vcmp.eq.s32.totalorder %v232_v59, 15  ;;  %s486_s14 = scalar_lea.vmem %s690_s4, 128  ;;  %p743_p12 = scmp.ne.s32.totalorder %s739_s18, 0 }
  0x3d   : > { %452 = vpow2.f32 %v145_v9  ;;  %p487_p11 = scmp.ne.s32.totalorder %s690_s4, %s486_s14  ;;  %s561_s16 = smov [#allocation5]  }
  0x3e   : > { %s490_s20 = sshll.u32 %s561_s16, 4  ;;  %s491_s20 = int_to_ptr.vmem [resolvable:$false] %s490_s20 }
  0x3f   : > { %p488_p13 = pnand %p487_p11, %p743_p12  ;;  %s492_s21 = scalar_lea.vmem %s491_s20, 256 }
  0x40   : > { %p493_p5 = scmp.lt.s32.totalorder %s690_s4, %s491_s20  ;;  %p494_p7 = scmp.lt.s32.totalorder %s492_s21, %s486_s14 }
  0x41   : > { %p489_p4 = pneg %p488_p13 }
  0x42   : > { %p495_p8 = por %p494_p7, %p493_p5 }
  0x44   : > { %p496_p10 = pnand %p495_p8, %p489_p4 }
  0x49   : > { %v451_v10 = vpop.eup %450 }
  0x4a   : > { %v453_v11 = vpop.eup %452  ;;  %v147_v12 = vadd.f32 1.0, %v451_v10 }
  0x4b   : > { %v148_v13 = vadd.f32 1.0, %v453_v11 }
  0x4c   : > { %454 = vlog2.f32 %v147_v12 }
  0x4d   : > { %456 = vlog2.f32 %v148_v13 }
  0x59   : > { %v455_v15 = vpop.eup %454 }
  0x5a   : > { %v457_v16 = vpop.eup %456  ;;  %v150_v17 = vmul.f32 0.6931472, %v455_v15 }
  0x5b   : > { %v152_v19 = vmul.f32 0.6931472, %v457_v16 }
  0x5c   : > { %v153_v20 = vadd.f32 %v150_v17, %v137_v14 }
  0x5d   : > { %v154_v21 = vadd.f32 %v152_v19, %v138_v18 }
  0x5e   : > { %158 = vrot.lane.b32.xlu0 %v153_v20, %s557_s17  ;;  %183 = vperm.xlu1 %447, %v153_v20   ;;  %v206_v52 = vmul.f32 0.5, %v153_v20 }
  0x5f   : > { %v207_v55 = vmul.f32 0.5, %v154_v21 }
  0x62   : > { %161 = vrot.lane.b32.xlu0 %v154_v21, %s557_s17  ;;  %188 = vperm.xlu1 %447, %v154_v21  }
  0x66   : > { %449 = vset.pattern.permute.xlu1 %v556_v1  ;;  %195 = vperm.xlu0 %448, %v153_v20  }
  0x67   : > { %199 = vperm.xlu1 %449, %v154_v21  }
  0xd0   : > { %v159_v22 = vpop.permute.xlu0 %158 }
  0xd1   : > { %v160_v23 = vsel %vm157_vm0, %v159_v22, %v153_v20 }
  0xd2   : > { %164 = vrot.lane.b32.xlu1 %v160_v23, %s557_s17 }
  0xd4   : > { %v162_v24 = vpop.permute.xlu0 %161 }
  0xd5   : > { %v163_v25 = vsel %vm157_vm0, %v162_v24, %v154_v21 }
  0xd6   : > { %166 = vrot.lane.b32.xlu0 %v163_v25, %s557_s17 }
  0xd9   : > { %v184_v26 = vpop.permute.xlu1 %183 }
  0xda   : > { %v191_v33 = vsel %vm180_vm1, %v184_v26, 0.0 }
  0xdd   : > { %v189_v28 = vpop.permute.xlu1 %188 }
  0xde   : > { %v192_v38 = vsel %vm180_vm1, %v189_v28, 0.0 }
  0xe1   : > { %v196_v31 = vpop.permute.xlu0 %195 }
  0xe2   : > { %v200_v30 = vpop.permute.xlu1 %199  ;;  %v202_v34 = vsel %vm193_vm2, %v196_v31, 0.0 }
  0xe3   : > { %v204_v36 = vadd.f32 %v202_v34, %v191_v33  ;;  %v203_v39 = vsel %vm193_vm2, %v200_v30, 0.0 }
  0xe4   : > { %v205_v41 = vadd.f32 %v203_v39, %v192_v38 }
 0x144   : > { %v165_v32 = vpop.permute.xlu1 %164 }
 0x145   : > { %v168_v35 = vsel %vm157_vm0, %v165_v32, %v153_v20 }
 0x146   : > { %172 = vrot.lane.b32.xlu1 %v168_v35, %s558_s25 }
 0x148   : > { %v167_v37 = vpop.permute.xlu0 %166 }
 0x149   : > { %v169_v40 = vsel %vm157_vm0, %v167_v37, %v154_v21 }
 0x14a   : > { %210 = vrot.lane.b32.xlu1 %v204_v36, %s559_s27  ;;  %174 = vrot.lane.b32.xlu0 %v169_v40, %s558_s25 }
 0x14e   : > { %212 = vrot.lane.b32.xlu0 %v205_v41, %s559_s27 }
 0x1b8   : > { %v173_v42 = vpop.permute.xlu1 %172 }
 0x1b9   : > { %v178_v43 = vadd.f32 %v173_v42, %v168_v35 }
 0x1bc   : > { %v211_v44 = vpop.permute.xlu1 %210  ;;  %v175_v45 = vpop.permute.xlu0 %174 }
 0x1bd   : > { %v216_v46 = vsub.f32 %v178_v43, %v211_v44  ;;  %v179_v48 = vadd.f32 %v175_v45, %v169_v40 }
 0x1bf   : > { %v218_v47 = vmul.f32 0.25, %v216_v46 }
 0x1c0   : > { %v213_v49 = vpop.permute.xlu0 %212 }
 0x1c1   : > { %v217_v50 = vsub.f32 %v179_v48, %v213_v49  ;;  %222 = vrot.lane.b32.xlu1 %v218_v47, %s560_s28 }
 0x1c3   : > { %v219_v51 = vmul.f32 0.25, %v217_v50 }
 0x1c5   : > { %224 = vrot.lane.b32.xlu0 %v219_v51, %s560_s28 }
 0x233   : > { %v223_v54 = vpop.permute.xlu1 %222 }
 0x234   : > { %v228_v56 = vadd.f32 %v223_v54, %v206_v52 }
 0x236   : > { %v233_v62 = vrot.slane %v228_v56, 7  ;;  %v238_v63 = vrot.slane %v228_v56, 1  ;;  %v258_v0 = vrot.slane %v228_v56, %v257_v57  ;;  %v263_v14 = vmul.f32 0.5, %v228_v56 }
 0x237   : > { %v225_v60 = vpop.permute.xlu0 %224 }
 0x238   : > { %v229_v61 = vadd.f32 %v225_v60, %v207_v55  ;;  %v260_v10 = vsel %vm254_vm5, %v258_v0, 0.0 }
 0x23a   : > { %v234_v1 = vrot.slane %v229_v61, 7  ;;  %v239_v2 = vrot.slane %v229_v61, 1  ;;  %v250_v3 = vrot.slane %v229_v61, %v249_v58  ;;  %v264_v15 = vmul.f32 0.5, %v229_v61 }
 0x23c   : > { %v236_v4 = vsel %vm235_vm3, %v233_v62, %v234_v1  ;;  %v237_v5 = vsel %vm235_vm3, %v234_v1, %v233_v62  ;;  %v241_v6 = vsel %vm240_vm4, %v238_v63, %v239_v2  ;;  %v242_v7 = vsel %vm240_vm4, %v239_v2, %v238_v63 }
 0x23d   : > { %v243_v8 = vadd.f32 %v241_v6, %v237_v5  ;;  %v244_v9 = vadd.f32 %v242_v7, %v236_v4  ;;  %v251_v11 = vsel %vm245_vm6, %v250_v3, 0.0 }
 0x23f   : > { %v265_v12 = vsub.f32 %v243_v8, %v251_v11  ;;  %v266_v13 = vsub.f32 %v244_v9, %v260_v10 }
 0x241   : > { %v267_v16 = vmul.f32 0.25, %v265_v12  ;;  %v268_v17 = vmul.f32 0.25, %v266_v13 }
 0x243   : > { %v269_v18 = vadd.f32 %v267_v16, %v263_v14  ;;  %v270_v19 = vadd.f32 %v268_v17, %v264_v15 }
 0x245   : > { %v271_v20 = vmul.f32 0.0025, %v269_v18  ;;  %v272_v21 = vmul.f32 0.0025, %v270_v19 }
 0x247   : > { %v388_v22 = vpack.c.bf16 %v271_v20, %v271_v20  ;;  %v389_v23 = vpack.c.bf16 %v272_v21, %v272_v21 }
 0x249   : > { %282 = vst.msk [vmem:[%s134_s3] sm:$0xf] %vm281_vm7, %v388_v22  ;;  %283 = vst.msk [vmem:[%s134_s3 + $0x4] sm:$0xf] %vm281_vm7, %v389_v23 }
 0x24a   : > { %499 = shalt.err (!%p496_p10)
}
 0x24b   : > { %s500_s22 = scalar_lea.hbm %s688_s13, 128  ;;  %s504_s30 = scalar_lea.hbm %s734_s1, 256 }
 0x24c   : > { %p501_p0 = scmp.ne.s32.totalorder %s688_s13, %s500_s22  ;;  %p505_p1 = scmp.lt.s32.totalorder %s688_s13, %s734_s1 }
 0x24d   : > { %p506_p3 = scmp.lt.s32.totalorder %s504_s30, %s500_s22 }
 0x24e   : > { %p502_p2 = pnand %p501_p0, %p743_p12 }
 0x24f   : > { %p507_p6 = por %p506_p3, %p505_p1 }
 0x250   : > { %p503_p9 = pneg %p502_p2 }
 0x252   : > { %p508_p11 = pnand %p507_p6, %p503_p9 }
 0x254   : > { %511 = shalt.err (!%p508_p11)
}
 0x255   : > { %s562_s27 = smov 64   ;;  %s563_s28 = smov 4  }
 0x256   : > { %393 = dma.vmem_to_hbm [thread:$0]  (%p743_p12), %s690_s4, 128, %s688_s13, %s285_s10, %s562_s27, %s562_s27, %s563_s28  }
 0x257 PF: > { %s313_s29 = sand.u32 1, %s538_s6   ;;  %p744_p13 = scmp.ne.s32.totalorder %s740_s19, 0 }
 0x258   : > { %p745_p4 = scmp.ge.s32.totalorder %s550_s9, 2  ;;  %s314_s2 = scalar_lea.sflag [#allocation4], %s313_s29 }
 0x25a   : > { %p400_p5 = pnand %p745_p4, %p744_p13 }
 0x25c   : > { %p401_p7 = pneg %p400_p5 }
 0x25e   : > { %533 = dma.done.wait (%p401_p7), %s314_s2, 128  }
 0x25f   : > { %535 = vsyncadd (%p401_p7), %s314_s2, 4294967168  ;;  %p14_p8 = scmp.ge.s32.totalorder %s599_s12, 4   ;;  %s746_s6 = smov %s542_s7 }
 0x260   : > { %s747_s7 = smov %s546_s8  ;;  %s748_s8 = smov %s611_s15 }
 0x261   : > { %s749_s9 = smov %s599_s12  ;;  %16 = sbr.rel (!%p14_p8) target bundleno = 5 (0x5), region = 69 }
 0x266   :  { %319 = vsyncpa [#allocation3], 1 }
 0x267   :  { %321 = vsyncpa [#allocation3 + $0x1], 1 }
 0x268   :  { %322 = vsyncpa [#allocation4], 1 }
 0x269   :  { %324 = vsyncpa [#allocation4 + $0x1], 1 }

</bundles_post_ra>
